<compile_context>
chip_gen: v7x
topology: tpu7x:2x2x1
jax: 0.10.0
libtpu: 0.0.40
codegen_flags: <defaults>
</compile_context>

<pallas_src>
from dataclasses import dataclass
from typing import List, Tuple

import numpy as np

import jax
import jax.numpy as jnp
from jax.experimental import pallas as pl
from jax.experimental.pallas import tpu as pltpu

_LANE = 128


# ---------------------------------------------------------------------------
# Small helpers.
# ---------------------------------------------------------------------------
def _round_up(x: int, m: int) -> int:
    return ((x + m - 1) // m) * m


def _sublane(dtype) -> int:
    # Rows per vreg: 8 for 32-bit, 16 for bf16/fp16, 32 for 8-bit.
    return max(8, 32 // max(jnp.dtype(dtype).itemsize, 1))


def _vmem_capacity_bytes() -> int:
    # Generation-aware: v5e/v6e = 128 MiB, v7x = 64 MiB per TensorCore.
    try:
        return int(pltpu.get_tpu_info().vmem_capacity_bytes)
    except Exception:
        return 64 * 1024 * 1024  # conservative fallback — safe on every gen


def _vmem_limits() -> Tuple[int, int]:
    """Returns (vmem_limit_bytes for CompilerParams, tile-choice budget)."""
    cap = _vmem_capacity_bytes()
    # Leave ~25% of physical VMEM for Mosaic-internal scratch; cap at 100 MiB.
    limit = min((cap * 3) // 4, 100 * 1024 * 1024)
    # Tile-choice budget: ~80% of the enforced limit (headroom for compiler
    # temporaries beyond the explicit accounting below).
    budget = (limit * 4) // 5
    return limit, budget


# ---------------------------------------------------------------------------
# Kernel bodies.
# ---------------------------------------------------------------------------
def _log_softmax_kernel(x_ref, o_ref):
    # Numerically-stable log_softmax along lanes with ONE full-width f32 temp:
    #   y = x - max(x);  o = y - log(sum(exp(y)))
    x = x_ref[...]
    m = jnp.max(x, axis=-1, keepdims=True).astype(jnp.float32)  # exact selection
    y = x.astype(jnp.float32) - m
    s = jnp.sum(jnp.exp(y), axis=-1, keepdims=True)
    o_ref[...] = y - jnp.log(s)


def _make_lse_kernel(v_total: int, v_chunk: int, needs_mask: bool):
    """Pass 1 of the large-vocab path: online max / sum-exp over vocab chunks."""

    def kernel(x_ref, lse_ref, m_acc, s_acc):
        j = pl.program_id(1)

        @pl.when(j == 0)
        def _():
            m_acc[...] = jnp.full_like(m_acc, -jnp.inf)
            s_acc[...] = jnp.zeros_like(s_acc)

        x = x_ref[...].astype(jnp.float32)
        if needs_mask:
            # Ragged vocab: neutralize out-of-range lanes of the last chunk.
            col = j * v_chunk + jax.lax.broadcasted_iota(jnp.int32, x.shape, 1)
            x = jnp.where(col < v_total, x, -jnp.inf)

        m_prev = m_acc[...]
        m_new = jnp.maximum(m_prev, jnp.max(x, axis=-1, keepdims=True))
        s_acc[...] = s_acc[...] * jnp.exp(m_prev - m_new) + jnp.sum(
            jnp.exp(x - m_new), axis=-1, keepdims=True
        )
        m_acc[...] = m_new

        @pl.when(j == pl.num_programs(1) - 1)
        def _():
            lse_ref[...] = m_acc[...] + jnp.log(s_acc[...])

    return kernel


def _subtract_lse_kernel(x_ref, lse_ref, o_ref):
    # Pass 2 of the large-vocab path: o = x - lse (fp32 out).
    o_ref[...] = x_ref[...].astype(jnp.float32) - lse_ref[...]


# ---------------------------------------------------------------------------
# pallas_call wrappers.
# ---------------------------------------------------------------------------
def _log_softmax_fused(x, row_tile: int, in_buffers: int, vmem_limit: int):
    """Single-kernel path: whole vocab row resident in VMEM."""
    n, v = x.shape
    in_bytes = jnp.dtype(x.dtype).itemsize
    grid = (pl.cdiv(n, row_tile),)  # ragged N: last block clipped, no pad copy

    if in_buffers > 2:
        in_spec = pl.BlockSpec(
            (row_tile, v), lambda i: (i, 0), pipeline_mode=pl.Buffered(in_buffers)
        )
    else:
        in_spec = pl.BlockSpec((row_tile, v), lambda i: (i, 0))

    return pl.pallas_call(
        _log_softmax_kernel,
        out_shape=jax.ShapeDtypeStruct((n, v), jnp.float32),
        grid_spec=pltpu.PrefetchScalarGridSpec(
            num_scalar_prefetch=0,
            grid=grid,
            in_specs=[in_spec],
            out_specs=pl.BlockSpec((row_tile, v), lambda i: (i, 0)),
        ),
        compiler_params=pltpu.CompilerParams(
            dimension_semantics=("parallel",),
            vmem_limit_bytes=vmem_limit,
        ),
        cost_estimate=pl.CostEstimate(
            flops=5 * n * v,
            transcendentals=n * v,
            bytes_accessed=n * v * (in_bytes + 4),
        ),
    )(x)


def _log_softmax_two_pass(x, row_tile: int, v_chunk: int, vmem_limit: int):
    """Large-vocab path: vocab (lane) chunked, two passes over the input."""
    n, v = x.shape
    in_bytes = jnp.dtype(x.dtype).itemsize
    nr = pl.cdiv(n, row_tile)
    nvc = pl.cdiv(v, v_chunk)
    needs_mask = (v % v_chunk) != 0

    # Pass 1: per-row log-sum-exp (tiny (n, 1) f32 output).
    lse = pl.pallas_call(
        _make_lse_kernel(v, v_chunk, needs_mask),
        out_shape=jax.ShapeDtypeStruct((n, 1), jnp.float32),
        grid_spec=pltpu.PrefetchScalarGridSpec(
            num_scalar_prefetch=0,
            grid=(nr, nvc),
            in_specs=[pl.BlockSpec((row_tile, v_chunk), lambda i, j: (i, j))],
            out_specs=pl.BlockSpec((row_tile, 1), lambda i, j: (i, 0)),
            scratch_shapes=[
                pltpu.VMEM((row_tile, 1), jnp.float32),  # running max
                pltpu.VMEM((row_tile, 1), jnp.float32),  # running sum-exp
            ],
        ),
        compiler_params=pltpu.CompilerParams(
            dimension_semantics=("parallel", "arbitrary"),
            vmem_limit_bytes=vmem_limit,
        ),
        cost_estimate=pl.CostEstimate(
            flops=3 * n * v,
            transcendentals=n * v,
            bytes_accessed=n * v * in_bytes + n * 4,
        ),
    )(x)

    # Pass 2: o = x - lse.
    out = pl.pallas_call(
        _subtract_lse_kernel,
        out_shape=jax.ShapeDtypeStruct((n, v), jnp.float32),
        grid_spec=pltpu.PrefetchScalarGridSpec(
            num_scalar_prefetch=0,
            grid=(nr, nvc),
            in_specs=[
                pl.BlockSpec((row_tile, v_chunk), lambda i, j: (i, j)),
                pl.BlockSpec((row_tile, 1), lambda i, j: (i, 0)),
            ],
            out_specs=pl.BlockSpec((row_tile, v_chunk), lambda i, j: (i, j)),
        ),
        compiler_params=pltpu.CompilerParams(
            dimension_semantics=("parallel", "arbitrary"),
            vmem_limit_bytes=vmem_limit,
        ),
        cost_estimate=pl.CostEstimate(
            flops=n * v,
            transcendentals=0,
            bytes_accessed=n * v * (in_bytes + 4) + n * 4,
        ),
    )(x, lse)
    return out


# ---------------------------------------------------------------------------
# Public entry point with generation- and vocab-aware tiling.
# ---------------------------------------------------------------------------
def log_softmax_pallas(logits: jax.Array) -> jax.Array:
    """log_softmax(logits, axis=-1) in fp32 via Pallas TPU kernels.

    logits: [N, V], any float dtype, any N / V (ragged handled via clipped
    partial blocks — no padding copies).  Returns float32 [N, V].
    """
    if logits.ndim != 2:
        raise ValueError(f"expected [N, V] logits, got shape {logits.shape}")
    n, v = logits.shape
    in_bytes = jnp.dtype(logits.dtype).itemsize
    sublane = _sublane(logits.dtype)
    vmem_limit, budget = _vmem_limits()

    # Triple-buffer the input only on big-VMEM chips (v5e/v6e 128 MiB), never
    # on v7x where the extra buffer would eat scarce 64 MiB VMEM.
    big_vmem = vmem_limit >= 90 * 1024 * 1024
    in_buffers = 3 if big_vmem else 2

    # Conservative per-element VMEM accounting for the fused path: pipelined
    # input buffers + double-buffered f32 output + ~2 full-width f32 temps.
    per_elem_fused = in_buffers * in_bytes + 2 * 4 + 2 * 4
    min_block_bytes = sublane * v * per_elem_fused

    # Aim for >= 4 row-grid steps when N allows (>= 2 per TensorCore on v7x
    # after megacore sharding of the "parallel" axis; harmless on v5e/v6e).
    n_groups = pl.cdiv(n, sublane)
    steps = min(4, n_groups)

    if min_block_bytes <= budget:
        # --- fused path: full vocab width per block -------------------------
        max_rows = max(
            sublane, (budget // (v * per_elem_fused)) // sublane * sublane
        )
        row_tile = min(max_rows, _round_up(pl.cdiv(n, steps), sublane))
        row_tile = max(sublane, row_tile)
        # Extra buffer is pointless (and slightly riskier VMEM-wise) for tiny
        # grids; only keep it when the pipeline can actually fill.
        if in_buffers > 2 and pl.cdiv(n, row_tile) < 3:
            in_buffers = 2
        return _log_softmax_fused(logits, row_tile, in_buffers, vmem_limit)

    # --- large-vocab fallback: vocab (lane) chunked two-pass -----------------
    per_elem_chunk = 2 * in_bytes + 2 * 4 + 2 * 4
    row_tile = max(
        sublane, min(_round_up(pl.cdiv(n, steps), sublane), 8 * sublane)
    )
    max_elems = max(_LANE * row_tile, budget // per_elem_chunk)
    v_chunk = max(_LANE, (max_elems // row_tile) // _LANE * _LANE)
    v_chunk = min(v_chunk, _round_up(v, _LANE))
    return _log_softmax_two_pass(logits, row_tile, v_chunk, vmem_limit)


# ---------------------------------------------------------------------------
# Minimal stand-ins for vLLM's SamplingMetadata / SequenceGroupToSample.
# ---------------------------------------------------------------------------
@dataclass
class SeqGroup:
    seq_ids: List[int]


@dataclass
class SamplingMetadata:
    seq_groups: List[SeqGroup]


class LogitsGrouper:
    """JAX/Pallas port of the PyTorch LogitsGrouper module."""

    def __init__(self):
        self.include_gpu_probs_tensor = False

    def forward(self, logits: jax.Array, sampling_metadata: SamplingMetadata):
        # Hot path: row-wise log_softmax in fp32 (PyTorch: dtype=torch.float).
        logprobs = log_softmax_pallas(logits)
        # Single device->host transfer (matches PyTorch's `.cpu()`); per-group
        # chunks are zero-copy numpy views — no O(num_groups) device slices.
        logprobs_host = np.asarray(jax.device_get(logprobs))
        grouped_logprobs = []
        grouped_seq_ids = []
        sample_idx = 0
        for seq_group in sampling_metadata.seq_groups:
            seq_ids = seq_group.seq_ids
            num_parent_seqs = len(seq_ids)
            grouped_logprobs.append(
                logprobs_host[sample_idx:sample_idx + num_parent_seqs]
            )
            grouped_seq_ids.append(seq_ids)
            sample_idx += num_parent_seqs
        return grouped_logprobs, grouped_seq_ids

    __call__ = forward


if __name__ == "__main__":
    # 1) Small, deterministic end-to-end example: 8 parent seqs, vocab = 256.
    N, V = 8, 256
    key = jax.random.PRNGKey(0)
    logits = (jax.random.normal(key, (N, V), dtype=jnp.float32) * 3.0).astype(
        jnp.bfloat16
    )
    metadata = SamplingMetadata(
        seq_groups=[SeqGroup([0, 1, 2]), SeqGroup([3, 4]), SeqGroup([5, 6, 7])]
    )
    grouper = LogitsGrouper()
    grouped_logprobs, grouped_seq_ids = grouper(logits, metadata)

    ref = np.asarray(
        jax.device_get(jax.nn.log_softmax(logits.astype(jnp.float32), axis=-1))
    )
    idx = 0
    for g, ids in zip(grouped_logprobs, grouped_seq_ids):
        assert g.dtype == np.float32
        assert g.shape == (len(ids), V)
        assert np.allclose(g, ref[idx:idx + len(ids)], atol=1e-5, rtol=1e-5)
        idx += len(ids)
    assert idx == N

    # 2) Ragged N (not a multiple of the row tile): exercises the cdiv grid
    #    with a clipped partial last block — no pad / slice copies.
    N2, V2 = 37, 1024
    logits2 = jax.random.normal(jax.random.PRNGKey(1), (N2, V2), jnp.bfloat16)
    out2 = jax.block_until_ready(log_softmax_pallas(logits2))
    ref2 = np.asarray(jax.nn.log_softmax(logits2.astype(jnp.float32), axis=-1))
    assert out2.shape == (N2, V2) and out2.dtype == jnp.float32
    assert np.allclose(np.asarray(out2), ref2, atol=1e-5, rtol=1e-5)

    # 3) Exercise the large-vocab two-pass path directly at small shapes
    #    (forced tiny tiles; ragged V -> lane masking in the LSE kernel).
    N3, V3 = 20, 300
    logits3 = jax.random.normal(jax.random.PRNGKey(2), (N3, V3), jnp.float32)
    out3 = jax.block_until_ready(
        _log_softmax_two_pass(
            logits3, row_tile=8, v_chunk=128, vmem_limit=48 * 1024 * 1024
        )
    )
    ref3 = np.asarray(jax.nn.log_softmax(logits3, axis=-1))
    assert out3.shape == (N3, V3) and out3.dtype == jnp.float32
    assert np.allclose(np.asarray(out3), ref3, atol=1e-5, rtol=1e-5)

    print("KERNEL_OK")
</pallas_src>

<mosaic_0001>
module attributes {stable_mosaic.version = 11 : i64} {
  func.func @_log_softmax_kernel(%arg0: i32, %arg1: memref<16x256xbf16, #tpu.memory_space<vmem>>, %arg2: memref<16x256xf32, #tpu.memory_space<vmem>>) attributes {dimension_semantics = [#tpu.dimension_semantics<parallel>], iteration_bounds = array<i64: 1>, scalar_prefetch = 0 : i64, scratch_operands = 0 : i64, tpu.core_type = #tpu.core_type<tc>, window_params = [{transform_indices = @transform_0, window_bounds = array<i64: 16, 256>}, {transform_indices = @transform_1, window_bounds = array<i64: 16, 256>}]} {
    %c0 = arith.constant 0 : index
    %c0_0 = arith.constant 0 : index
    %0 = vector.load %arg1[%c0, %c0_0] : memref<16x256xbf16, #tpu.memory_space<vmem>>, vector<16x256xbf16>
    %cst = arith.constant dense<0xFF80> : vector<16xbf16>
    %1 = vector.multi_reduction <maximumf>, %0, %cst [1] : vector<16x256xbf16> to vector<16xbf16>
    %2 = vector.shape_cast %1 : vector<16xbf16> to vector<16x1xbf16>
    %3 = arith.extf %2 : vector<16x1xbf16> to vector<16x1xf32>
    %4 = arith.extf %0 : vector<16x256xbf16> to vector<16x256xf32>
    %5 = vector.broadcast %3 : vector<16x1xf32> to vector<16x256xf32>
    %6 = arith.subf %4, %5 : vector<16x256xf32>
    %7 = math.exp %6 : vector<16x256xf32>
    %cst_1 = arith.constant dense<0.000000e+00> : vector<16xf32>
    %8 = vector.multi_reduction <add>, %7, %cst_1 [1] : vector<16x256xf32> to vector<16xf32>
    %9 = vector.shape_cast %8 : vector<16xf32> to vector<16x1xf32>
    %10 = math.log %9 : vector<16x1xf32>
    %11 = vector.broadcast %10 : vector<16x1xf32> to vector<16x256xf32>
    %12 = arith.subf %6, %11 : vector<16x256xf32>
    %c0_2 = arith.constant 0 : index
    %c0_3 = arith.constant 0 : index
    %13 = vector.load %arg2[%c0_2, %c0_3] : memref<16x256xf32, #tpu.memory_space<vmem>>, vector<16x256xf32>
    tpu.vector_store %arg2[%c0_2, %c0_3], %12 {strides = array<i32>} : memref<16x256xf32, #tpu.memory_space<vmem>>, vector<16x256xf32>,
    return
  }
  func.func @transform_0(%arg0: i32) -> (i32, i32) {
    %c0_i32 = arith.constant 0 : i32
    %c0_i32_0 = arith.constant 0 : i32
    return %arg0, %c0_i32 : i32, i32
  }
  func.func @transform_1(%arg0: i32) -> (i32, i32) {
    %c0_i32 = arith.constant 0 : i32
    %c0_i32_0 = arith.constant 0 : i32
    return %arg0, %c0_i32 : i32, i32
  }
}

</mosaic_0001>

<bundles_post_ra>
// kernel: tpu_custom_call.1
= control target key start
LH: loop header
LB: loop body
LE: loop exit
PB: predicated region body
PF: predicated region fallthrough
CT: control target
= control target key end

     0   :  { %6 = vsyncpa [#allocation3], 0  ;;  %s201_s0 = inlined_call_operand.hbm [shape: bf16[8,256], index: 0, kind: input, shape index: {}]   ;;  %s202_s1 = inlined_call_operand.hbm [shape: f32[8,256], index: 1, kind: output, shape index: {}]  }
   0x1   :  { %7 = vsyncpa [#allocation4], 0 }
   0x2   :  { %12 = vsyncadd [#allocation3], 128  ;;  %s161_s6 = smov [#allocation2]   ;;  %s113_s10 = scalar_lea.hbm %s201_s0, 128 }
   0x3   :  { %s13_s7 = sshll.u32 %s161_s6, 4  ;;  %p114_p0 = scmp.ne.s32.totalorder %s201_s0, %s113_s10  ;;  %s14_s7 = int_to_ptr.vmem [resolvable:$true] %s13_s7 }
   0x4   :  { %p117_p1 = scmp.lt.u32.totalorder %s113_s10, %s201_s0 }
   0x6   :  { %p119_p2 = pnand %p117_p1, %p114_p0 }
   0x8   :  { %122 = shalt.err (!%p119_p2)
}
   0x9   :  { %s123_s15 = scalar_lea.vmem %s14_s7, 128  ;;  %s127_s16 = scalar_lea.vmem %s14_s7, 256 }
   0xa   :  { %p124_p3 = scmp.ne.s32.totalorder %s14_s7, %s123_s15  ;;  %p128_p4 = scmp.lt.s32.totalorder %s14_s7, %s14_s7 }
   0xb   :  { %p129_p5 = scmp.lt.s32.totalorder %s127_s16, %s123_s15 }
   0xd   :  { %p130_p6 = por %p129_p5, %p128_p4 }
   0xf   :  { %p131_p7 = pnand %p130_p6, %p124_p3 }
  0x11   :  { %134 = shalt.err (!%p131_p7)
}
  0x12   :  { %s162_s17 = smov 128   ;;  %s163_s18 = smov 8  }
  0x13   :  { %19 = dma.hbm_to_vmem [thread:$0]  %s201_s0, 128, %s14_s7, [#allocation3], %s162_s17, %s162_s17, %s163_s18  }
  0x14   :  { %157 = dma.done.wait [#allocation3], 256  }
  0x15   :  { %158 = vsyncadd [#allocation3], 4294967040  ;;  %v23_v0 = vld [vmem:[#allocation2] sm:$0xff]  ;;  %v24_v1 = vld [vmem:[#allocation2 + $0x8] sm:$0xff] }
  0x16   :  { %v91_v2 = vcombine.low %v23_v0, %v24_v1  ;;  %v92_v3 = vcombine.high %v23_v0, %v24_v1  ;;  %v40_v5 = vunpack.c.l.bf16 %v23_v0  ;;  %v41_v6 = vunpack.c.h.bf16 %v23_v0 }
  0x17   :  { %v42_v7 = vunpack.c.l.bf16 %v24_v1  ;;  %v43_v8 = vunpack.c.h.bf16 %v24_v1 }
  0x18   :  { %v35_v4 = vmax.bf16 %v92_v3, %v91_v2 }
  0x1a   :  { %36 = vmax.xlane.bf16.xlu0 %v35_v4 }
  0xab   :  { %v37_v9 = vpop.xlane.xlu0 %36 }
  0xac   :  { %v38_v10 = vunpack.c.l.bf16 %v37_v9  ;;  %v39_v11 = vunpack.c.h.bf16 %v37_v9 }
  0xae   :  { %v44_v12 = vsub.f32 %v40_v5, %v38_v10  ;;  %v45_v13 = vsub.f32 %v41_v6, %v38_v10  ;;  %v46_v14 = vsub.f32 %v42_v7, %v39_v11  ;;  %v47_v15 = vsub.f32 %v43_v8, %v39_v11 }
  0xb0   :  { %v48_v16 = vmul.f32 1.442695, %v44_v12  ;;  %v50_v17 = vmul.f32 1.442695, %v45_v13  ;;  %v52_v18 = vmul.f32 1.442695, %v46_v14 }
  0xb1   :  { %v54_v19 = vmul.f32 1.442695, %v47_v15 }
  0xb2   :  { %101 = vpow2.f32 %v48_v16 }
  0xb3   :  { %103 = vpow2.f32 %v50_v17 }
  0xb4   :  { %105 = vpow2.f32 %v52_v18 }
  0xb5   :  { %107 = vpow2.f32 %v54_v19 }
  0xbc   :  { %v102_v20 = vpop.eup %101 }
  0xbd   :  { %v104_v21 = vpop.eup %103 }
  0xbe   :  { %v106_v22 = vpop.eup %105  ;;  %v56_v23 = vadd.f32 %v104_v21, %v102_v20 }
  0xbf   :  { %v108_v24 = vpop.eup %107 }
  0xc0   :  { %v59_v25 = vadd.f32 %v108_v24, %v106_v22  ;;  %57 = vadd.xlane.f32.xlu0 %v56_v23 }
  0xc2   :  { %60 = vadd.xlane.f32.xlu1 %v59_v25 }
 0x14d   :  { %v58_v26 = vpop.xlane.xlu0 %57 }
 0x14e   :  { %109 = vlog2.f32 %v58_v26 }
 0x14f   :  { %v61_v27 = vpop.xlane.xlu1 %60 }
 0x150   :  { %111 = vlog2.f32 %v61_v27 }
 0x158   :  { %v110_v28 = vpop.eup %109 }
 0x159   :  { %v63_v29 = vmul.f32 0.6931472, %v110_v28 }
 0x15a   :  { %v112_v30 = vpop.eup %111 }
 0x15b   :  { %v65_v31 = vmul.f32 0.6931472, %v112_v30  ;;  %v66_v32 = vsub.f32 %v44_v12, %v63_v29  ;;  %v67_v33 = vsub.f32 %v45_v13, %v63_v29 }
 0x15d   :  { %v68_v34 = vsub.f32 %v46_v14, %v65_v31  ;;  %v69_v35 = vsub.f32 %v47_v15, %v65_v31  ;;  %70 = vst [vmem:[#allocation5] sm:$0xff] %v66_v32  ;;  %71 = vst [vmem:[#allocation5 + $0x8] sm:$0xff] %v67_v33 }
 0x15f   :  { %72 = vst [vmem:[#allocation5 + $0x10] sm:$0xff] %v68_v34  ;;  %73 = vst [vmem:[#allocation5 + $0x18] sm:$0xff] %v69_v35 }
 0x160   :  { %78 = vsyncadd [#allocation4], 256  ;;  %s164_s0 = smov [#allocation5]  }
 0x161   :  { %s79_s21 = sshll.u32 %s164_s0, 4  ;;  %s80_s21 = int_to_ptr.vmem [resolvable:$true] %s79_s21 }
 0x162   :  { %s135_s22 = scalar_lea.vmem %s80_s21, 256  ;;  %s139_s23 = scalar_lea.vmem %s80_s21, 512 }
 0x163   :  { %p136_p8 = scmp.ne.s32.totalorder %s80_s21, %s135_s22  ;;  %p140_p9 = scmp.lt.s32.totalorder %s80_s21, %s80_s21 }
 0x164   :  { %p141_p10 = scmp.lt.s32.totalorder %s139_s23, %s135_s22 }
 0x166   :  { %p142_p11 = por %p141_p10, %p140_p9 }
 0x168   :  { %p143_p12 = pnand %p142_p11, %p136_p8 }
 0x16a   :  { %146 = shalt.err (!%p143_p12)
}
 0x16b   :  { %s147_s26 = scalar_lea.hbm %s202_s1, 256 }
 0x16c   :  { %p148_p13 = scmp.ne.s32.totalorder %s202_s1, %s147_s26  ;;  %p151_p0 = scmp.lt.u32.totalorder %s147_s26, %s202_s1 }
 0x16e   :  { %p153_p1 = pnand %p151_p0, %p148_p13 }
 0x170   :  { %156 = shalt.err (!%p153_p1)
}
 0x171   :  { %s165_s2 = smov 256   ;;  %s166_s3 = smov 16  }
 0x172   :  { %85 = dma.vmem_to_hbm [thread:$0]  %s80_s21, 256, %s202_s1, [#allocation4], %s165_s2, %s165_s2, %s166_s3  }
 0x173   :  { %159 = dma.done.wait [#allocation4], 512  }
 0x174   :  { %160 = vsyncadd [#allocation4], 4294966784 }
 0x175   :  { %89 = vsyncpa [#allocation3], 1 }
 0x176   :  { %90 = vsyncpa [#allocation4], 1 }

</bundles_post_ra>
